<compile_context>
chip_gen: v6e
topology: v6e:2x2x1
jax: 0.10.0
libtpu: 0.0.40
codegen_flags: <defaults>
</compile_context>

<pallas_src>
import functools

import jax
import jax.numpy as jnp
from jax.experimental import pallas as pl
from jax.experimental.pallas import tpu as pltpu


# ---------------------------------------------------------------------------
# Generation-aware VMEM budgeting
# ---------------------------------------------------------------------------

def _vmem_params():
    """Returns (vmem_limit_bytes, working_budget_bytes, small_vmem_part)."""
    try:
        phys = int(pltpu.get_tpu_info().vmem_capacity_bytes)
    except Exception:
        phys = None
    if phys is None:                                   # conservative fallback
        return 32 << 20, 18 << 20, True
    limit = max(16 << 20, min((phys * 3) // 4, 96 << 20))
    budget = max(8 << 20, min((phys * 7) // 16, 56 << 20))
    small = phys <= (80 << 20)                         # v7x-class: 64 MiB/TC, 2 TCs
    return limit, budget, small


# ---------------------------------------------------------------------------
# In-kernel helpers
# ---------------------------------------------------------------------------

def _pooled_sums_f32(x):
    """Per-channel sums over the lane (last) axis with f32 accumulation.

    Avoids materializing a widened f32 copy of the x block:
      * f32 input   : plain lane-axis reduce (already f32).
      * narrow input: contraction with a ones vector on the MXU, which
        accumulates natively in f32 (preferred_element_type) at zero VMEM cost;
        the MXU is otherwise idle in this memory-bound op.
    x: (..., C, L)  ->  (..., C) float32.
    """
    if x.dtype == jnp.float32:
        return jnp.sum(x, axis=-1)
    ones = jnp.ones((x.shape[-1], 1), dtype=x.dtype)
    dn = (((x.ndim - 1,), (0,)), ((), ()))
    return jax.lax.dot_general(x, ones, dn,
                               preferred_element_type=jnp.float32)[..., 0]


# ---------------------------------------------------------------------------
# Kernels (NCL blocks: (bt, C, Ltile); C on sublanes, L on lanes)
# ---------------------------------------------------------------------------

def _ese_fused_kernel(x_ref, wt_ref, b_ref, o_ref, *, inv_len):
    """Single pass over a (bt, C, L) block: pool + 1x1 conv + hsigmoid + scale."""
    x = x_ref[...]                                              # (bt, C, L)
    pooled = _pooled_sums_f32(x) * inv_len                      # (bt, C) f32
    y = jnp.dot(pooled, wt_ref[...].astype(jnp.float32),
                preferred_element_type=jnp.float32)
    y = y + b_ref[...].astype(jnp.float32)                      # (bt, C)
    s = jnp.clip(y + 3.0, 0.0, 6.0) * (1.0 / 6.0)               # hard-sigmoid
    o_ref[...] = (x * s[:, :, None].astype(x.dtype)).astype(o_ref.dtype)


def _ese_pool_kernel(x_ref, psum_ref, *, tail_len):
    """Split path, pass 1: partial channel sums for one (batch, L-tile) block.

    x_ref: (1, C, Lt)   psum_ref: (1, 1, 1, C) f32
    tail_len: number of valid lanes in the LAST tile (0 if L % Lt == 0).
    Only the final tile pays for the shorter (statically sliced) sum; every
    other tile runs the full-width unmasked path.
    """
    if tail_len == 0:
        psum_ref[0, 0] = _pooled_sums_f32(x_ref[...])
    else:
        last = pl.num_programs(1) - 1

        @pl.when(pl.program_id(1) < last)
        def _():
            psum_ref[0, 0] = _pooled_sums_f32(x_ref[...])

        @pl.when(pl.program_id(1) == last)
        def _():
            psum_ref[0, 0] = _pooled_sums_f32(x_ref[:, :, :tail_len])


def _ese_scale_kernel(x_ref, s_ref, o_ref):
    """Split path, pass 2: out = x * s (broadcast over L); fully parallel."""
    x = x_ref[...]                                              # (1, C, Lt)
    o_ref[...] = (x * s_ref[...].astype(x.dtype)).astype(o_ref.dtype)


# ---------------------------------------------------------------------------
# Block sizing (explicit VMEM math; no f32 widen temps anymore)
# ---------------------------------------------------------------------------

def _choose_batch_tile(B, C, L, x_bytes, fixed, budget):
    """Largest batch tile whose fused block (double-buffered in+out) fits."""
    per_b = 4 * L * C * x_bytes + 32 * C        # in/out x2 buffers + tiny f32 temps
    avail = budget - fixed
    if avail < per_b:
        return 0
    return int(min(B, avail // per_b))


def _lane_tile(L, per_lane_bytes, budget):
    """L-tile (lane axis): largest multiple of 128 fitting the budget, or full L."""
    avail = max(budget, per_lane_bytes * 128)
    lt = avail // per_lane_bytes
    if lt >= L or L <= 128:
        return int(L)
    return int(min(max(128, (lt // 128) * 128), L))


def _sanitize_lane_tile(lt, L):
    lt = int(min(max(int(lt), 1), L))
    if lt >= L or L <= 128:
        return int(L)
    return max(128, (lt // 128) * 128)


# ---------------------------------------------------------------------------
# Wrapper
# ---------------------------------------------------------------------------

def ese_module(x, w, b, *, l_tile=None, force_split=False):
    """eSEModule forward.  x: (B, C, L) (PyTorch Conv1d / NCL layout -- no
    transposes needed), w: Conv1d weight (C, C) or (C, C, 1), b: bias (C,)."""
    B, C, L = x.shape
    xb = x.dtype.itemsize
    w2 = w.reshape(C, C)

    vmem_limit, budget, small_vmem = _vmem_params()

    wt = jnp.transpose(w2)                                      # (C_in, C_out)
    b_row = b.reshape(1, C)
    fixed = 2 * C * C * wt.dtype.itemsize + 2 * C * b_row.dtype.itemsize + (1 << 20)
    if wt.dtype != jnp.float32:
        fixed += C * C * 4                                      # in-kernel f32 copy of W

    bt = 0 if force_split else _choose_batch_tile(B, C, L, xb, fixed, budget)
    # v7x-class parts have 2 TensorCores; a B==1 fused call is a 1-step grid that
    # pins everything to one core -- prefer the (B, L-tiles)-parallel split path.
    if bt >= 1 and B == 1 and small_vmem and L >= 512:
        bt = 0

    if bt >= 1:
        # ---- fused single-pass kernel: x read from HBM exactly once ----------
        if B >= 2:
            # >=2 grid steps: shards over both v7x TCs and enables DMA overlap.
            bt = min(bt, pl.cdiv(B, 2))
        grid_b = pl.cdiv(B, bt)
        cost = pl.CostEstimate(
            flops=int(3 * B * L * C + 2 * B * C * C),
            transcendentals=0,
            bytes_accessed=int(2 * B * L * C * xb
                               + C * C * wt.dtype.itemsize + C * 4))
        return pl.pallas_call(
            functools.partial(_ese_fused_kernel, inv_len=1.0 / L),
            out_shape=jax.ShapeDtypeStruct((B, C, L), x.dtype),
            grid_spec=pltpu.PrefetchScalarGridSpec(
                num_scalar_prefetch=0,
                grid=(grid_b,),
                in_specs=[
                    pl.BlockSpec((bt, C, L), lambda i: (i, 0, 0)),
                    pl.BlockSpec((C, C), lambda i: (0, 0)),
                    pl.BlockSpec((1, C), lambda i: (0, 0)),
                ],
                out_specs=pl.BlockSpec((bt, C, L), lambda i: (i, 0, 0)),
            ),
            compiler_params=pltpu.CompilerParams(
                dimension_semantics=("parallel",),
                vmem_limit_bytes=vmem_limit),
            cost_estimate=cost,
        )(x, wt, b_row)

    # ---- split path: parallel partial-sum pool kernel -> tiny jnp FC -> scale --
    if l_tile is not None:
        lt_pool = _sanitize_lane_tile(l_tile, L)
        lt_scale = lt_pool
    else:
        lt_pool = _lane_tile(L, 2 * C * xb, budget - (1 << 20))
        # The scale pass carries no weight / accumulator and moves 2/3 of the
        # split path's HBM traffic: size its (larger) tile independently.
        lt_scale = _lane_tile(L, 4 * C * xb, budget - (1 << 20))
    n_pool = pl.cdiv(L, lt_pool)
    n_scale = pl.cdiv(L, lt_scale)

    pool_cost = pl.CostEstimate(
        flops=int(2 * B * L * C), transcendentals=0,
        bytes_accessed=int(B * L * C * xb + B * n_pool * C * 4))
    partial_sums = pl.pallas_call(
        functools.partial(_ese_pool_kernel, tail_len=L % lt_pool),
        out_shape=jax.ShapeDtypeStruct((B, n_pool, 1, C), jnp.float32),
        grid_spec=pltpu.PrefetchScalarGridSpec(
            num_scalar_prefetch=0,
            grid=(B, n_pool),
            in_specs=[pl.BlockSpec((1, C, lt_pool), lambda i, j: (i, 0, j))],
            out_specs=pl.BlockSpec((1, 1, 1, C), lambda i, j: (i, j, 0, 0)),
        ),
        compiler_params=pltpu.CompilerParams(
            dimension_semantics=("parallel", "parallel"),
            vmem_limit_bytes=vmem_limit),
        cost_estimate=pool_cost,
    )(x)

    # Tiny (B, C) FC + hard-sigmoid in plain jnp between the two pallas_calls:
    # negligible FLOPs, and it keeps the weight out of the kernels' VMEM entirely.
    pooled = jnp.sum(partial_sums, axis=(1, 2)) * (1.0 / L)     # (B, C) f32
    y = jnp.dot(pooled, w2.astype(jnp.float32).T,
                precision=jax.lax.Precision.HIGHEST)
    y = y + b.astype(jnp.float32)[None, :]
    s = (jnp.clip(y + 3.0, 0.0, 6.0) * (1.0 / 6.0))[:, :, None]  # (B, C, 1) f32

    scale_cost = pl.CostEstimate(
        flops=int(B * L * C), transcendentals=0,
        bytes_accessed=int(2 * B * L * C * xb + B * C * 4))
    return pl.pallas_call(
        _ese_scale_kernel,
        out_shape=jax.ShapeDtypeStruct((B, C, L), x.dtype),
        grid_spec=pltpu.PrefetchScalarGridSpec(
            num_scalar_prefetch=0,
            grid=(B, n_scale),
            in_specs=[
                pl.BlockSpec((1, C, lt_scale), lambda i, j: (i, 0, j)),
                pl.BlockSpec((1, C, 1), lambda i, j: (i, 0, 0)),
            ],
            out_specs=pl.BlockSpec((1, C, lt_scale), lambda i, j: (i, 0, j)),
        ),
        compiler_params=pltpu.CompilerParams(
            dimension_semantics=("parallel", "parallel"),
            vmem_limit_bytes=vmem_limit),
        cost_estimate=scale_cost,
    )(x, s)


# ---------------------------------------------------------------------------
# Pure-JAX reference (PyTorch layout)
# ---------------------------------------------------------------------------

def ese_reference(x, w, b):
    xf = x.astype(jnp.float32)
    C = x.shape[1]
    w2 = w.reshape(C, C).astype(jnp.float32)
    pooled = jnp.mean(xf, axis=-1, keepdims=True)               # (B, C, 1)
    y = jnp.einsum("oc,bci->boi", w2, pooled,
                   precision=jax.lax.Precision.HIGHEST)
    y = y + b.astype(jnp.float32)[None, :, None]
    s = jnp.clip(y + 3.0, 0.0, 6.0) / 6.0
    return xf * s


if __name__ == "__main__":
    key = jax.random.PRNGKey(0)
    k1, k2, k3, k4, k5 = jax.random.split(key, 5)

    # --- test 1: fused single-pass path ---------------------------------------
    B, C, L = 2, 8, 16
    x = jax.random.normal(k1, (B, C, L), dtype=jnp.float32)
    bound = C ** -0.5                                  # PyTorch Conv1d init bound
    w = jax.random.uniform(k2, (C, C, 1), jnp.float32, -bound, bound)  # (out,in,1)
    b = jax.random.uniform(k3, (C,), jnp.float32, -bound, bound)
    out = ese_module(x, w, b)
    jax.block_until_ready(out)
    ref = ese_reference(x, w, b)
    assert out.shape == (B, C, L) and out.dtype == x.dtype
    assert jnp.allclose(out, ref, atol=1e-5, rtol=1e-5), "fused path mismatch"

    # --- test 2: forced split path with an L tail (pool -> jnp FC -> scale) ----
    B2, C2, L2 = 2, 16, 300
    x2 = jax.random.normal(k4, (B2, C2, L2), dtype=jnp.float32)
    bound2 = C2 ** -0.5
    w_2 = jax.random.uniform(k2, (C2, C2), jnp.float32, -bound2, bound2)
    b_2 = jax.random.uniform(k3, (C2,), jnp.float32, -bound2, bound2)
    out2 = ese_module(x2, w_2, b_2, force_split=True, l_tile=128)
    jax.block_until_ready(out2)
    ref2 = ese_reference(x2, w_2, b_2)
    assert jnp.allclose(out2, ref2, atol=1e-4, rtol=1e-4), "split path mismatch"

    # --- test 3: bf16 I/O on the fused path (MXU ones-matmul pooling) ----------
    xb16 = x.astype(jnp.bfloat16)
    outb = ese_module(xb16, w, b)
    jax.block_until_ready(outb)
    refb = ese_reference(xb16, w, b)
    assert outb.dtype == jnp.bfloat16
    assert jnp.allclose(outb.astype(jnp.float32), refb, atol=5e-2, rtol=5e-2), \
        "bf16 path mismatch"

    # --- test 4: batch tile that does not divide B (partial last block) --------
    B3 = 3
    x3 = jax.random.normal(k5, (B3, C, L), dtype=jnp.float32)
    out3 = ese_module(x3, w, b)
    jax.block_until_ready(out3)
    ref3 = ese_reference(x3, w, b)
    assert jnp.allclose(out3, ref3, atol=1e-5, rtol=1e-5), "partial-batch mismatch"

    print("KERNEL_OK")
</pallas_src>

<mosaic_0001>
module attributes {stable_mosaic.version = 11 : i64} {
  func.func @_ese_fused_kernel(%arg0: i32, %arg1: memref<1x8x16xf32, #tpu.memory_space<vmem>>, %arg2: memref<8x8xf32, #tpu.memory_space<vmem>>, %arg3: memref<1x8xf32, #tpu.memory_space<vmem>>, %arg4: memref<1x8x16xf32, #tpu.memory_space<vmem>>) attributes {dimension_semantics = [#tpu.dimension_semantics<parallel>], iteration_bounds = array<i64: 2>, scalar_prefetch = 0 : i64, scratch_operands = 0 : i64, tpu.core_type = #tpu.core_type<tc>, window_params = [{transform_indices = @transform_0, window_bounds = array<i64: 1, 8, 16>}, {pipeline_mode = #tpu.pipeline_mode<synchronous>, transform_indices = @transform_1, window_bounds = array<i64: 8, 8>}, {pipeline_mode = #tpu.pipeline_mode<synchronous>, transform_indices = @transform_2, window_bounds = array<i64: 1, 8>}, {transform_indices = @transform_3, window_bounds = array<i64: 1, 8, 16>}]} {
    %c0 = arith.constant 0 : index
    %c0_0 = arith.constant 0 : index
    %c0_1 = arith.constant 0 : index
    %0 = vector.load %arg1[%c0, %c0_0, %c0_1] : memref<1x8x16xf32, #tpu.memory_space<vmem>>, vector<1x8x16xf32>
    %cst = arith.constant dense<0.000000e+00> : vector<1x8xf32>
    %1 = vector.multi_reduction <add>, %0, %cst [2] : vector<1x8x16xf32> to vector<1x8xf32>
    %cst_2 = arith.constant 6.250000e-02 : f32
    %2 = vector.broadcast %cst_2 : f32 to vector<1x8xf32>
    %3 = arith.mulf %1, %2 : vector<1x8xf32>
    %c0_3 = arith.constant 0 : index
    %c0_4 = arith.constant 0 : index
    %4 = vector.load %arg2[%c0_3, %c0_4] : memref<8x8xf32, #tpu.memory_space<vmem>>, vector<8x8xf32>
    %cst_5 = arith.constant dense<0.000000e+00> : vector<1x8xf32>
    %5 = tpu.matmul %3, %4, %cst_5 {dimension_numbers = #tpu.dot_dimension_numbers<[1], [0], [0], [1], [0, 0, 1, 1], [], []>} : vector<1x8xf32>, vector<8x8xf32>, vector<1x8xf32> -> vector<1x8xf32>
    %c0_6 = arith.constant 0 : index
    %c0_7 = arith.constant 0 : index
    %6 = vector.load %arg3[%c0_6, %c0_7] : memref<1x8xf32, #tpu.memory_space<vmem>>, vector<1x8xf32>
    %7 = arith.addf %5, %6 : vector<1x8xf32>
    %cst_8 = arith.constant 3.000000e+00 : f32
    %8 = vector.broadcast %cst_8 : f32 to vector<1x8xf32>
    %9 = arith.addf %7, %8 : vector<1x8xf32>
    %cst_9 = arith.constant 0.000000e+00 : f32
    %cst_10 = arith.constant 6.000000e+00 : f32
    %10 = vector.broadcast %cst_9 : f32 to vector<1x8xf32>
    %11 = arith.maximumf %10, %9 : vector<1x8xf32>
    %12 = vector.broadcast %cst_10 : f32 to vector<1x8xf32>
    %13 = arith.minimumf %12, %11 : vector<1x8xf32>
    %cst_11 = arith.constant 0.166666672 : f32
    %14 = vector.broadcast %cst_11 : f32 to vector<1x8xf32>
    %15 = arith.mulf %13, %14 : vector<1x8xf32>
    %16 = vector.shape_cast %15 : vector<1x8xf32> to vector<1x8x1xf32>
    %17 = vector.broadcast %16 : vector<1x8x1xf32> to vector<1x8x16xf32>
    %18 = arith.mulf %0, %17 : vector<1x8x16xf32>
    %c0_12 = arith.constant 0 : index
    %c0_13 = arith.constant 0 : index
    %c0_14 = arith.constant 0 : index
    %19 = vector.load %arg4[%c0_12, %c0_13, %c0_14] : memref<1x8x16xf32, #tpu.memory_space<vmem>>, vector<1x8x16xf32>
    tpu.vector_store %arg4[%c0_12, %c0_13, %c0_14], %18 {strides = array<i32>} : memref<1x8x16xf32, #tpu.memory_space<vmem>>, vector<1x8x16xf32>,
    return
  }
  func.func @transform_0(%arg0: i32) -> (i32, i32, i32) {
    %c0_i32 = arith.constant 0 : i32
    %c0_i32_0 = arith.constant 0 : i32
    %c0_i32_1 = arith.constant 0 : i32
    return %arg0, %c0_i32, %c0_i32_0 : i32, i32, i32
  }
  func.func @transform_1(%arg0: i32) -> (i32, i32) {
    %c0_i32 = arith.constant 0 : i32
    %c0_i32_0 = arith.constant 0 : i32
    %c0_i32_1 = arith.constant 0 : i32
    return %c0_i32, %c0_i32_0 : i32, i32
  }
  func.func @transform_2(%arg0: i32) -> (i32, i32) {
    %c0_i32 = arith.constant 0 : i32
    %c0_i32_0 = arith.constant 0 : i32
    %c0_i32_1 = arith.constant 0 : i32
    return %c0_i32, %c0_i32_0 : i32, i32
  }
  func.func @transform_3(%arg0: i32) -> (i32, i32, i32) {
    %c0_i32 = arith.constant 0 : i32
    %c0_i32_0 = arith.constant 0 : i32
    %c0_i32_1 = arith.constant 0 : i32
    return %arg0, %c0_i32, %c0_i32_0 : i32, i32, i32
  }
}

</mosaic_0001>

<bundles_post_ra>
// kernel: tpu_custom_call.1
= control target key start
LH: loop header
LB: loop body
LE: loop exit
PB: predicated region body
PF: predicated region fallthrough
CT: control target
= control target key end

     0   :  { %8 = vsyncpa [#allocation3], 0  ;;  %s799_s0 = inlined_call_operand.hbm [shape: f32[2,8,16], index: 0, kind: input, shape index: {}]   ;;  %s800_s1 = inlined_call_operand.hbm [shape: f32[8,8], index: 1, kind: input, shape index: {}]   ;;  %s801_s2 = inlined_call_operand.vmem [shape: f32[1,8], index: 2, kind: input, shape index: {}]   ;;  %s802_s3 = inlined_call_operand.hbm [shape: f32[2,8,16], index: 3, kind: output, shape index: {}]  }
   0x1   :  { %10 = vsyncpa [#allocation3 + $0x1], 0 }
   0x2   :  { %11 = vsyncpa [#allocation6], 0 }
   0x3   :  { %12 = vsyncpa [#allocation4], 0 }
   0x4   :  { %14 = vsyncpa [#allocation4 + $0x1], 0  ;;  %s624_s12 = smov 0   ;;  %s626_s13 = smov 0  }
   0x5   :  { %s628_s14 = smov 0   ;;  %s630_s15 = smov 0  }
   0x6 LB: > { %s645_s16 = sadd.s32 4294967295, %s597_s15   ;;  %s394_s17 = sadd.s32 4294967294, %s597_s15   ;;  %s597_s15 = sphi %s630_s15, %s825_s15   ;;  %s593_s14 = sphi %s628_s14, %s824_s14   ;;  %s589_s13 = sphi %s626_s13, %s823_s13   ;;  %s585_s12 = sphi %s624_s12, %s822_s12  }
   0x7   : > { %p40_p0 = scmp.ne.s32.totalorder %s589_s13, %s585_s12  ;;  %p803_p1 = scmp.eq.s32.totalorder %s645_s16, 0 }
   0x8   : > { %p112_p3 = scmp.eq.s32.totalorder %s394_s17, 1  ;;  %p395_p5 = scmp.ge.s32.totalorder %s597_s15, 1 }
   0x9   : > { %p654_p4 = por %p803_p1, %p40_p0  ;;  %p119_p7 = scmp.lt.s32.totalorder %s597_s15, 3 }
   0xa   : > { %p659_p6 = por %p112_p3, %p40_p0  ;;  %s599_s21 = smov [#allocation5]  }
   0xb   : > { %s807_s18 = scalar_select %p654_p4, 1, 0 }
   0xc   : > { %s808_s19 = scalar_select %p659_p6, 1, 0 }
   0xd   : > { %p664_p8 = pnand %p395_p5, %p119_p7  ;;  %s132_s22 = sshll.u32 %s599_s21, 4  ;;  %s133_s22 = int_to_ptr.vmem [resolvable:$true] %s132_s22 }
   0xe   : > { %s672_s23 = sadd.s32 1, %s597_s15   ;;  %s27_s27 = sadd.s32 1, %s593_s14 }
   0xf   : > { %s809_s20 = scalar_select %p664_p8, 1, 0 }
  0x10   : > { %p424_p10 = pneg %p664_p8  ;;  %s24_s25 = ssub.s32 %s597_s15, %s672_s23 }
  0x11   : > { %p682_p12 = scmp.eq.s32.totalorder %s24_s25, 0  ;;  %p34_p13 = scmp.ne.s32.totalorder %s593_s14, %s589_s13 }
  0x12   : > { %p676_p11 = pnand %p424_p10, %p803_p1  ;;  %s486_s28 = scalar_lea.vmem %s133_s22, 128 }
  0x13   : > { %p487_p3 = scmp.ne.s32.totalorder %s133_s22, %s486_s28  ;;  %p494_p9 = scmp.lt.s32.totalorder %s133_s22, %s133_s22 }
  0x14   : > { %p477_p0 = pneg %p676_p11  ;;  %p495_p2 = scmp.lt.s32.totalorder %s486_s28, %s486_s28 }
  0x16   : > { %p489_p5 = pnand %p487_p3, %p477_p0  ;;  %p496_p10 = por %p495_p2, %p494_p9 }
  0x18   : > { %p490_p7 = pneg %p489_p5 }
  0x1a   : > { %p497_p1 = pnand %p496_p10, %p490_p7 }
  0x1c   : > { %500 = shalt.err (!%p497_p1)
}
  0x1d   : > { %427 = dma.hbm_to_vmem [thread:$0]  (!%p676_p11), %s800_s1, 128, %s133_s22, [#allocation6]  }
  0x1e   : > { %s699_s4 = scalar_select %p682_p12, %s593_s14, %s27_s27  }
  0x1f   : > { %p35_p1 = scmp.eq.s32.totalorder %s597_s15, 0  ;;  %p812_p2 = scmp.eq.s32.totalorder %s645_s16, 1 }
  0x20   : > { %p437_p0 = scmp.lt.s32.totalorder %s597_s15, 2  ;;  %s146_s6 = sand.u32 1, %s593_s14  }
  0x21   : > { %p707_p9 = por %p812_p2, %p34_p13  ;;  %p36_p3 = por %p35_p1, %p34_p13 }
  0x22   : > { %s398_s7 = sshll.u32 %s146_s6, 3  ;;  %s399_s8 = sshll.u32 %s597_s15, 7 }
  0x23   : > { %s813_s5 = scalar_select %p707_p9, 1, 0 }
  0x24   : > { %s720_s11 = scalar_lea.hbm %s799_s0, %s399_s8  ;;  %s150_s17 = scalar_lea.vmem [#allocation2], %s398_s7 }
  0x25   : > { %s157_s21 = sshll.u32 %s150_s17, 4  ;;  %p722_p11 = pnand %p437_p0, %p36_p3  ;;  %s158_s21 = int_to_ptr.vmem [resolvable:$true] %s157_s21 }
  0x26   : > { %s147_s24 = scalar_lea.sflag [#allocation3], %s146_s6  ;;  %s501_s25 = scalar_lea.hbm %s720_s11, 128 }
  0x27   : > { %p502_p12 = scmp.ne.s32.totalorder %s720_s11, %s501_s25  ;;  %p503_p13 = pneg %p722_p11 }
  0x28   : > { %s506_s28 = scalar_lea.hbm %s799_s0, 256  ;;  %p507_p10 = scmp.lt.s32.totalorder %s720_s11, %s799_s0 }
  0x29   : > { %p504_p5 = pnand %p503_p13, %p502_p12  ;;  %p508_p1 = scmp.lt.s32.totalorder %s506_s28, %s501_s25 }
  0x2b   : > { %p505_p7 = pneg %p504_p5  ;;  %p509_p2 = por %p508_p1, %p507_p10 }
  0x2d   : > { %p510_p0 = pnand %p509_p2, %p505_p7 }
  0x2f   : > { %513 = shalt.err (!%p510_p0)
}
  0x30   : > { %s514_s7 = scalar_lea.vmem %s158_s21, 128  ;;  %s600_s6 = smov [#allocation2]  }
  0x31   : > { %p515_p3 = scmp.ne.s32.totalorder %s158_s21, %s514_s7  ;;  %s519_s8 = sshll.u32 %s600_s6, 4  ;;  %s520_s8 = int_to_ptr.vmem [resolvable:$false] %s519_s8 }
  0x32   : > { %s521_s9 = scalar_lea.vmem %s520_s8, 256  ;;  %p522_p12 = scmp.lt.s32.totalorder %s158_s21, %s520_s8 }
  0x33   : > { %p517_p6 = pnand %p515_p3, %p503_p13  ;;  %p523_p5 = scmp.lt.s32.totalorder %s521_s9, %s514_s7 }
  0x35   : > { %p518_p9 = pneg %p517_p6  ;;  %p524_p4 = por %p523_p5, %p522_p12 }
  0x37   : > { %p525_p8 = pnand %p524_p4, %p518_p9 }
  0x39   : > { %528 = shalt.err (!%p525_p8)
}
  0x3a   : > { %431 = dma.hbm_to_vmem [thread:$0]  (!%p722_p11), %s720_s11, 128, %s158_s21, %s147_s24  }
  0x3b   : > { %p815_p7 = scmp.ne.s32.totalorder %s809_s20, 0 }
  0x3c   : > { %s743_s10 = sand.u32 (!%p815_p7), 1, %s589_s13   ;;  %p816_p4 = scmp.ne.s32.totalorder (!%p815_p7), %s807_s18, 0 }
  0x3d   : > { %166 = sbr.rel (%p815_p7) target bundleno = 549 (0x225), region = 32  ;;  %s401_s17 = sshll.u32 (!%p815_p7), %s743_s10, 3 }
  0x3e   : > { %s169_s25 = scalar_lea.sflag (!%p815_p7), [#allocation3], %s743_s10  ;;  %s172_s26 = scalar_lea.vmem (!%p815_p7), [#allocation2], %s401_s17 }
  0x42   : > { %572 = dma.done.wait (%p816_p4), %s169_s25, 128  }
  0x43   : > { %574 = vsyncadd (%p816_p4), %s169_s25, 4294967168  ;;  %p817_p6 = scmp.eq.s32.totalorder %s645_s16, 0 }
  0x45   : > { %576 = dma.done.wait (%p817_p6), [#allocation6], 128   ;;  %p818_p8 = pmov %p817_p6 }
  0x46   : > { %vm200_vm0 = vcmask 130048   ;;  %v199_v0 = vld [vmem:[%s172_s26] sm:$0xff]  ;;  %v601_v2 = vmov 0.0   ;;  %v205_v3 = vld [vmem:[#allocation5] sm:$0xff]  ;;  %vm602_vm1 = vmmov 0   ;;  %v208_v4 = vlaneseq  ;;  %s406_s11 = sshll.u32 %s645_s16, 7 }
  0x47   : > { %578 = vsyncadd (%p818_p8), [#allocation6], 4294967168  ;;  %v201_v1 = vsel %vm200_vm0, %v199_v0, 0.0  ;;  %411 = vmatprep.subr.mxu0 %v601_v2  ;;  %413 = vmatprep.mubr.msk.f32.mxu0 %vm602_vm1, %v601_v2  ;;  %vm214_vm2 = vcmask 64512   ;;  %v206_v11 = vld [vmem:[%s801_s2] sm:$0x1]  ;;  %s312_s28 = scalar_lea.hbm %s802_s3, %s406_s11 }
  0x48   : > { %202 = vadd.xlane.f32.xlu0 %v201_v1  ;;  %412 = vmatpush3.msra.mxu0 %v205_v3  ;;  %v209_v5 = vand.u32 127, %v208_v4  ;;  %v211_v6 = vshrl.u32 %v208_v4, 7  ;;  %s198_s21 = scalar_lea.vmem [#allocation7], %s401_s17  ;;  %s301_s29 = scalar_lea.sflag [#allocation4], %s743_s10 }
  0x49   : > { %s314_s22 = sshll.u32 %s198_s21, 4  ;;  %p819_p11 = scmp.ne.s32.totalorder %s813_s5, 0  ;;  %s315_s22 = int_to_ptr.vmem [resolvable:$true] %s314_s22 }
  0x4a   : > { %v212_v7 = vsub.s32 %v209_v5, %v211_v6  ;;  %v293_v18 = vsub.s32 0, %v211_v6  ;;  %s529_s30 = scalar_lea.vmem %s315_s22, 128  ;;  %s603_s7 = smov [#allocation7]  }
  0x4b   : > { %p530_p9 = scmp.ne.s32.totalorder %s315_s22, %s529_s30  ;;  %s533_s16 = sshll.u32 %s603_s7, 4  ;;  %s534_s16 = int_to_ptr.vmem [resolvable:$false] %s533_s16 }
  0x4c   : > { %s535_s6 = scalar_lea.vmem %s534_s16, 256  ;;  %p536_p1 = scmp.lt.s32.totalorder %s315_s22, %s534_s16 }
  0x4d   : > { %p531_p13 = pnand %p530_p9, %p819_p11  ;;  %p537_p2 = scmp.lt.s32.totalorder %s535_s6, %s529_s30 }
  0x4f   : > { %p532_p10 = pneg %p531_p13  ;;  %p538_p0 = por %p537_p2, %p536_p1 }
  0x51   : > { %p539_p3 = pnand %p538_p0, %p532_p10 }
  0xd1   : > { %v203_v8 = vpop.xlane.xlu0 %202 }
  0xd2   : > { %v204_v9 = vmul.f32 0.0625, %v203_v8 }
  0xd4   : > { %v213_v10 = vrot.slane %v204_v9, %v212_v7 }
  0xd6   : > { %414 = vmatmul.mubr.msk.f32.vlgmr.msra.gmra.mxu0 %vm214_vm2, %v213_v10 }
 0x196   : > { %v283_v12 = vpop.f32.mrf.mxu0 }
 0x197   : > { %v284_v13 = vadd.f32 %v283_v12, %v206_v11 }
 0x198   : > { %v415_v14 = vpop.f32.mrf.mxu0 }
 0x199   : > { %v287_v15 = vadd.f32 3.0, %v284_v13 }
 0x19b   : > { %v288_v16 = vmax.f32 %v287_v15, 0.0 }
 0x19d   : > { %v289_v17 = vmin.f32 %v288_v16, 6.0 }
 0x19f   : > { %v290_v19 = vmul.f32 0.16666667, %v289_v17 }
 0x1a1   : > { %v294_v20 = vrot.slane %v290_v19, %v293_v18 }
 0x1a3   : > { %296 = vbcast.lane.b32.xlu0 %v294_v20, 256 }
 0x215   : > { %v297_v21 = vpop.permute.xlu0 %296 }
 0x216   : > { %v298_v22 = vmul.f32 %v297_v21, %v199_v0 }
 0x218   : > { %299 = vst.msk [vmem:[%s198_s21] sm:$0xff] %vm200_vm0, %v298_v22 }
 0x219   : > { %542 = shalt.err (!%p539_p3)
}
 0x21a   : > { %s543_s8 = scalar_lea.hbm %s312_s28, 128  ;;  %s547_s17 = scalar_lea.hbm %s802_s3, 256 }
 0x21b   : > { %p544_p12 = scmp.ne.s32.totalorder %s312_s28, %s543_s8  ;;  %p548_p4 = scmp.lt.s32.totalorder %s312_s28, %s802_s3 }
 0x21c   : > { %p549_p6 = scmp.lt.s32.totalorder %s547_s17, %s543_s8 }
 0x21d   : > { %p545_p5 = pnand %p544_p12, %p819_p11 }
 0x21e   : > { %p550_p8 = por %p549_p6, %p548_p4 }
 0x21f   : > { %p546_p7 = pneg %p545_p5 }
 0x221   : > { %p551_p9 = pnand %p550_p8, %p546_p7 }
 0x223   : > { %554 = shalt.err (!%p551_p9)
}
 0x224   : > { %422 = dma.vmem_to_hbm [thread:$0]  (%p819_p11), %s315_s22, 128, %s312_s28, %s301_s29  }
 0x225 PF: > { %s326_s18 = sand.u32 1, %s585_s12   ;;  %p820_p13 = scmp.ne.s32.totalorder %s808_s19, 0 }
 0x226   : > { %p821_p10 = scmp.ge.s32.totalorder %s597_s15, 2  ;;  %s327_s20 = scalar_lea.sflag [#allocation4], %s326_s18 }
 0x228   : > { %p433_p1 = pnand %p821_p10, %p820_p13 }
 0x22a   : > { %p434_p2 = pneg %p433_p1 }
 0x22c   : > { %580 = dma.done.wait (%p434_p2), %s327_s20, 128  }
 0x22d   : > { %582 = vsyncadd (%p434_p2), %s327_s20, 4294967168  ;;  %p17_p0 = scmp.ge.s32.totalorder %s672_s23, 4   ;;  %s822_s12 = smov %s589_s13 }
 0x22e   : > { %s823_s13 = smov %s593_s14  ;;  %s824_s14 = smov %s699_s4 }
 0x22f   : > { %s825_s15 = smov %s672_s23  ;;  %19 = sbr.rel (!%p17_p0) target bundleno = 6 (0x6), region = 81 }
 0x234   :  { %332 = vsyncpa [#allocation3], 1 }
 0x235   :  { %334 = vsyncpa [#allocation3 + $0x1], 1 }
 0x236   :  { %335 = vsyncpa [#allocation6], 1 }
 0x237   :  { %336 = vsyncpa [#allocation4], 1 }
 0x238   :  { %338 = vsyncpa [#allocation4 + $0x1], 1 }

</bundles_post_ra>
